<compile_context>
chip_gen: v5e
topology: v5e:2x2
jax: 0.10.0
libtpu: 0.0.40
codegen_flags: <defaults>
</compile_context>

<pallas_src>
import functools

import jax
import jax.numpy as jnp
from jax.experimental import pallas as pl
from jax.experimental.pallas import tpu as pltpu

GAMMA = 1.5   # modulating-factor exponent (module default)
ALPHA = 0.25  # class-balance factor (module default)

_LANES = 128
_SUBLANES = 8
_WIDTH = 1024                      # lane-dense 2-D width used inside the kernel
_TARGET_BLOCK_ELEMS = 512 * 1024   # ~2 MiB f32 per input block


def _focal_loss_kernel(pred_ref, label_ref, out_ref, *, approx):
    x = pred_ref[...].astype(jnp.float32)
    y = label_ref[...].astype(jnp.float32)

    # One exp per element, shared by the stable BCE and the sigmoid.
    e = jnp.exp(-jnp.abs(x))

    # Numerically-stable BCE-with-logits (reduction='none'):
    #   max(x, 0) - x*y + log1p(exp(-|x|))
    bce = jnp.maximum(x, 0.0) - x * y + jnp.log1p(e)

    # sigmoid(x) from the same e:  r = 1/(1+e);  p = r if x>=0 else 1-r
    one_plus_e = 1.0 + e
    if approx:
        r = pl.reciprocal(one_plus_e, approx=True)   # one EUP push vs divide chain
    else:
        r = 1.0 / one_plus_e
    pred_prob = jnp.where(x >= 0.0, r, 1.0 - r)

    p_t = y * pred_prob + (1.0 - y) * (1.0 - pred_prob)
    # Clamp guards approx-reciprocal overshoot (p_t marginally > 1 -> sqrt(neg)).
    t = jnp.maximum(1.0 - p_t, 0.0)
    loss = bce * (t * jnp.sqrt(t))                    # t ** 1.5 without exp/log

    # alpha > 0 branch (alpha = 0.25)
    loss = loss * (y * ALPHA + (1.0 - y) * (1.0 - ALPHA))

    # Reduce (tile_rows, 1024) -> (8, 128) lane-dense partial using only
    # tile-aligned static slices + VPU vreg adds (no iota/select, no full
    # cross-lane XLU reduce).  Final tiny sum / C happens in plain JAX.
    tr, w = loss.shape
    acc = loss[0:_SUBLANES, :]
    for k in range(1, tr // _SUBLANES):
        acc = acc + loss[k * _SUBLANES:(k + 1) * _SUBLANES, :]
    part = acc[:, 0:_LANES]
    for k in range(1, w // _LANES):
        part = part + acc[:, k * _LANES:(k + 1) * _LANES]
    out_ref[0] = part


def _pick_tile_rows(rows, target_rows):
    """Largest multiple of 8 dividing `rows`, capped so (a) the block stays near
    the VMEM target and (b) there are >= 2 row tiles whenever possible (keeps
    both v7x TensorCores busy via the 'parallel' row axis)."""
    cap = max(_SUBLANES, min(target_rows, rows))
    if rows > _SUBLANES:
        cap = min(cap, max(_SUBLANES, (rows // 2) // _SUBLANES * _SUBLANES))
    best = _SUBLANES
    t = _SUBLANES
    while t <= cap:
        if rows % t == 0:
            best = t
        t += _SUBLANES
    return best


@functools.partial(jax.jit, static_argnames=("approx",))
def focal_loss(pred, label, *, approx=True):
    """Pallas TPU implementation of ultralytics FocalLoss.forward for (N, C) inputs.

    Inputs may be f32 or bf16 (labels {0,1} are exact in bf16); the kernel
    upcasts to f32 internally.  Set approx=False for bit-for-bit-exact sigmoid.
    """
    assert pred.shape == label.shape and pred.ndim == 2
    N, C = pred.shape
    total = N * C

    # Flatten to a lane-dense (rows, 1024) layout.  Pad (if needed) with
    # (pred=+40, label=1): bce ~ 4e-18 and (1-p_t)^1.5 underflows to 0 in f32,
    # so padded elements contribute exactly 0 to the sum.
    pad = (-total) % (_WIDTH * _SUBLANES)
    p = pred.reshape(-1)
    l = label.reshape(-1)
    if pad:
        p = jnp.concatenate([p, jnp.full((pad,), 40.0, dtype=p.dtype)])
        l = jnp.concatenate([l, jnp.ones((pad,), dtype=l.dtype)])
    rows = (total + pad) // _WIDTH
    p2 = p.reshape(rows, _WIDTH)
    l2 = l.reshape(rows, _WIDTH)

    tile_rows = _pick_tile_rows(rows, _TARGET_BLOCK_ELEMS // _WIDTH)
    gr = rows // tile_rows

    elems = rows * _WIDTH
    cost = pl.CostEstimate(
        flops=20 * elems,
        transcendentals=4 * elems,  # exp, log1p, reciprocal, sqrt
        bytes_accessed=(p2.size * p2.dtype.itemsize
                        + l2.size * l2.dtype.itemsize
                        + gr * _SUBLANES * _LANES * 4),
    )

    partials = pl.pallas_call(
        functools.partial(_focal_loss_kernel, approx=approx),
        out_shape=jax.ShapeDtypeStruct((gr, _SUBLANES, _LANES), jnp.float32),
        grid_spec=pltpu.PrefetchScalarGridSpec(
            num_scalar_prefetch=0,
            grid=(gr,),
            in_specs=[
                pl.BlockSpec((tile_rows, _WIDTH), lambda i: (i, 0)),
                pl.BlockSpec((tile_rows, _WIDTH), lambda i: (i, 0)),
            ],
            # One (8,128) lane-dense partial block per row tile, written once.
            out_specs=pl.BlockSpec((1, _SUBLANES, _LANES), lambda i: (i, 0, 0)),
        ),
        compiler_params=pltpu.CompilerParams(
            dimension_semantics=("parallel",),
            vmem_limit_bytes=48 * 1024 * 1024,
        ),
        cost_estimate=cost,
    )(p2, l2)

    # loss.mean(1).sum() == loss.sum() / C for a 2-D (N, C) input; padding adds 0.
    return jnp.sum(partials) / jnp.float32(C)


def focal_loss_ref(pred, label, gamma=GAMMA, alpha=ALPHA):
    """Pure-JAX reference mirroring the PyTorch module."""
    x = pred.astype(jnp.float32)
    y = label.astype(jnp.float32)
    bce = jnp.maximum(x, 0.0) - x * y + jnp.log1p(jnp.exp(-jnp.abs(x)))
    p = jax.nn.sigmoid(x)
    p_t = y * p + (1.0 - y) * (1.0 - p)
    loss = bce * (1.0 - p_t) ** gamma
    if alpha > 0:
        loss = loss * (y * alpha + (1.0 - y) * (1.0 - alpha))
    return loss.mean(axis=1).sum()


if __name__ == "__main__":
    key = jax.random.PRNGKey(0)
    k_pred, k_label = jax.random.split(key)

    # Detection-like class count (C=80, not a multiple of 128): exercises the
    # flatten + pad path.
    N, C = 32, 80
    pred = jax.random.normal(k_pred, (N, C), dtype=jnp.float32) * 2.0
    label = (jax.random.uniform(k_label, (N, C)) > 0.5).astype(jnp.float32)
    ref = focal_loss_ref(pred, label)

    out_exact = jax.block_until_ready(focal_loss(pred, label, approx=False))
    assert jnp.allclose(out_exact, ref, rtol=1e-5, atol=1e-5), (out_exact, ref)

    out_fast = jax.block_until_ready(focal_loss(pred, label, approx=True))
    assert jnp.allclose(out_fast, ref, rtol=2e-2, atol=2e-2), (out_fast, ref)

    # Exact multiple of 8*1024 elements: no-pad path, two parallel row tiles.
    N2, C2 = 128, 128
    pred2 = jax.random.normal(k_pred, (N2, C2), dtype=jnp.float32)
    label2 = (jax.random.uniform(k_label, (N2, C2)) > 0.5).astype(jnp.float32)
    ref2 = focal_loss_ref(pred2, label2)
    out2 = jax.block_until_ready(focal_loss(pred2, label2, approx=False))
    assert jnp.allclose(out2, ref2, rtol=1e-5, atol=1e-4), (out2, ref2)

    print("KERNEL_OK")
</pallas_src>

<mosaic_0001>
module attributes {stable_mosaic.version = 11 : i64} {
  func.func @_focal_loss_kernel(%arg0: i32, %arg1: memref<8x1024xf32, #tpu.memory_space<vmem>>, %arg2: memref<8x1024xf32, #tpu.memory_space<vmem>>, %arg3: memref<1x8x128xf32, #tpu.memory_space<vmem>>) attributes {dimension_semantics = [#tpu.dimension_semantics<parallel>], iteration_bounds = array<i64: 1>, scalar_prefetch = 0 : i64, scratch_operands = 0 : i64, tpu.core_type = #tpu.core_type<tc>, window_params = [{transform_indices = @transform_0, window_bounds = array<i64: 8, 1024>}, {transform_indices = @transform_1, window_bounds = array<i64: 8, 1024>}, {transform_indices = @transform_2, window_bounds = array<i64: 1, 8, 128>}]} {
    %c0 = arith.constant 0 : index
    %c0_0 = arith.constant 0 : index
    %0 = vector.load %arg1[%c0, %c0_0] : memref<8x1024xf32, #tpu.memory_space<vmem>>, vector<8x1024xf32>
    %c0_1 = arith.constant 0 : index
    %c0_2 = arith.constant 0 : index
    %1 = vector.load %arg2[%c0_1, %c0_2] : memref<8x1024xf32, #tpu.memory_space<vmem>>, vector<8x1024xf32>
    %2 = math.absf %0 : vector<8x1024xf32>
    %cst = arith.constant 0.000000e+00 : f32
    %3 = vector.broadcast %cst : f32 to vector<8x1024xf32>
    %4 = arith.subf %3, %2 : vector<8x1024xf32>
    %5 = math.exp %4 : vector<8x1024xf32>
    %cst_3 = arith.constant 0.000000e+00 : f32
    %6 = vector.broadcast %cst_3 : f32 to vector<8x1024xf32>
    %7 = arith.maximumf %0, %6 : vector<8x1024xf32>
    %8 = arith.mulf %0, %1 : vector<8x1024xf32>
    %9 = arith.subf %7, %8 : vector<8x1024xf32>
    %10 = math.log1p %5 : vector<8x1024xf32>
    %11 = arith.addf %9, %10 : vector<8x1024xf32>
    %cst_4 = arith.constant 1.000000e+00 : f32
    %12 = vector.broadcast %cst_4 : f32 to vector<8x1024xf32>
    %13 = arith.addf %12, %5 : vector<8x1024xf32>
    %cst_5 = arith.constant 1.000000e+00 : f32
    %14 = vector.broadcast %cst_5 : f32 to vector<8x1024xf32>
    %15 = arith.divf %14, %13 : vector<8x1024xf32>
    %cst_6 = arith.constant 0.000000e+00 : f32
    %16 = vector.broadcast %cst_6 : f32 to vector<8x1024xf32>
    %17 = arith.cmpf oge, %0, %16 : vector<8x1024xf32>
    %cst_7 = arith.constant 1.000000e+00 : f32
    %18 = vector.broadcast %cst_7 : f32 to vector<8x1024xf32>
    %19 = arith.subf %18, %15 : vector<8x1024xf32>
    %20 = arith.select %17, %15, %19 : vector<8x1024xi1>, vector<8x1024xf32>
    %21 = arith.mulf %1, %20 : vector<8x1024xf32>
    %cst_8 = arith.constant 1.000000e+00 : f32
    %22 = vector.broadcast %cst_8 : f32 to vector<8x1024xf32>
    %23 = arith.subf %22, %1 : vector<8x1024xf32>
    %cst_9 = arith.constant 1.000000e+00 : f32
    %24 = vector.broadcast %cst_9 : f32 to vector<8x1024xf32>
    %25 = arith.subf %24, %20 : vector<8x1024xf32>
    %26 = arith.mulf %23, %25 : vector<8x1024xf32>
    %27 = arith.addf %21, %26 : vector<8x1024xf32>
    %cst_10 = arith.constant 1.000000e+00 : f32
    %28 = vector.broadcast %cst_10 : f32 to vector<8x1024xf32>
    %29 = arith.subf %28, %27 : vector<8x1024xf32>
    %cst_11 = arith.constant 0.000000e+00 : f32
    %30 = vector.broadcast %cst_11 : f32 to vector<8x1024xf32>
    %31 = arith.maximumf %29, %30 : vector<8x1024xf32>
    %32 = math.sqrt %31 : vector<8x1024xf32>
    %33 = arith.mulf %31, %32 : vector<8x1024xf32>
    %34 = arith.mulf %11, %33 : vector<8x1024xf32>
    %cst_12 = arith.constant 2.500000e-01 : f32
    %35 = vector.broadcast %cst_12 : f32 to vector<8x1024xf32>
    %36 = arith.mulf %1, %35 : vector<8x1024xf32>
    %cst_13 = arith.constant 1.000000e+00 : f32
    %37 = vector.broadcast %cst_13 : f32 to vector<8x1024xf32>
    %38 = arith.subf %37, %1 : vector<8x1024xf32>
    %cst_14 = arith.constant 7.500000e-01 : f32
    %39 = vector.broadcast %cst_14 : f32 to vector<8x1024xf32>
    %40 = arith.mulf %38, %39 : vector<8x1024xf32>
    %41 = arith.addf %36, %40 : vector<8x1024xf32>
    %42 = arith.mulf %34, %41 : vector<8x1024xf32>
    %43 = vector.extract_strided_slice %42 {offsets = [0, 0], sizes = [8, 128], strides = [1, 1]} : vector<8x1024xf32> to vector<8x128xf32>
    %44 = vector.extract_strided_slice %42 {offsets = [0, 128], sizes = [8, 128], strides = [1, 1]} : vector<8x1024xf32> to vector<8x128xf32>
    %45 = arith.addf %43, %44 : vector<8x128xf32>
    %46 = vector.extract_strided_slice %42 {offsets = [0, 256], sizes = [8, 128], strides = [1, 1]} : vector<8x1024xf32> to vector<8x128xf32>
    %47 = arith.addf %45, %46 : vector<8x128xf32>
    %48 = vector.extract_strided_slice %42 {offsets = [0, 384], sizes = [8, 128], strides = [1, 1]} : vector<8x1024xf32> to vector<8x128xf32>
    %49 = arith.addf %47, %48 : vector<8x128xf32>
    %50 = vector.extract_strided_slice %42 {offsets = [0, 512], sizes = [8, 128], strides = [1, 1]} : vector<8x1024xf32> to vector<8x128xf32>
    %51 = arith.addf %49, %50 : vector<8x128xf32>
    %52 = vector.extract_strided_slice %42 {offsets = [0, 640], sizes = [8, 128], strides = [1, 1]} : vector<8x1024xf32> to vector<8x128xf32>
    %53 = arith.addf %51, %52 : vector<8x128xf32>
    %54 = vector.extract_strided_slice %42 {offsets = [0, 768], sizes = [8, 128], strides = [1, 1]} : vector<8x1024xf32> to vector<8x128xf32>
    %55 = arith.addf %53, %54 : vector<8x128xf32>
    %56 = vector.extract_strided_slice %42 {offsets = [0, 896], sizes = [8, 128], strides = [1, 1]} : vector<8x1024xf32> to vector<8x128xf32>
    %57 = arith.addf %55, %56 : vector<8x128xf32>
    %c0_15 = arith.constant 0 : index
    %c0_16 = arith.constant 0 : index
    %c0_17 = arith.constant 0 : index
    %58 = vector.load %arg3[%c0_15, %c0_16, %c0_17] : memref<1x8x128xf32, #tpu.memory_space<vmem>>, vector<1x8x128xf32>
    %59 = vector.shape_cast %58 : vector<1x8x128xf32> to vector<8x128xf32>
    %60 = vector.shape_cast %57 : vector<8x128xf32> to vector<1x8x128xf32>
    tpu.vector_store %arg3[%c0_15, %c0_16, %c0_17], %60 {strides = array<i32>} : memref<1x8x128xf32, #tpu.memory_space<vmem>>, vector<1x8x128xf32>,
    return
  }
  func.func @transform_0(%arg0: i32) -> (i32, i32) {
    %c0_i32 = arith.constant 0 : i32
    %c0_i32_0 = arith.constant 0 : i32
    return %arg0, %c0_i32 : i32, i32
  }
  func.func @transform_1(%arg0: i32) -> (i32, i32) {
    %c0_i32 = arith.constant 0 : i32
    %c0_i32_0 = arith.constant 0 : i32
    return %arg0, %c0_i32 : i32, i32
  }
  func.func @transform_2(%arg0: i32) -> (i32, i32, i32) {
    %c0_i32 = arith.constant 0 : i32
    %c0_i32_0 = arith.constant 0 : i32
    %c0_i32_1 = arith.constant 0 : i32
    return %arg0, %c0_i32, %c0_i32_0 : i32, i32, i32
  }
}

</mosaic_0001>

<bundles_post_ra>
// kernel: focal_loss.1
= control target key start
LH: loop header
LB: loop body
LE: loop exit
PB: predicated region body
PF: predicated region fallthrough
CT: control target
= control target key end

     0   :  { %s1335_s0 = inlined_call_operand.vmem [shape: f32[8,1024], index: 0, kind: input, shape index: {}]   ;;  %s1336_s1 = inlined_call_operand.vmem [shape: f32[8,1024], index: 1, kind: input, shape index: {}]   ;;  %s1337_s2 = inlined_call_operand.vmem [shape: f32[1,8,128], index: 2, kind: output, shape index: {}]  }
   0x1   :  { %v609_v0 = vld [vmem:[%s1335_s0] sm:$0xff]  ;;  %v614_v1 = vld [vmem:[%s1335_s0 + $0x8] sm:$0xff]  ;;  %v619_v2 = vld [vmem:[%s1335_s0 + $0x10] sm:$0xff] }
   0x2   :  { %v27_v3 = vand.u32 2147483647, %v609_v0  ;;  %v625_v4 = vld [vmem:[%s1335_s0 + $0x18] sm:$0xff]  ;;  %v28_v5 = vand.u32 2147483647, %v614_v1  ;;  %v631_v6 = vld [vmem:[%s1335_s0 + $0x20] sm:$0xff] }
   0x3   :  { %v636_v7 = vld [vmem:[%s1335_s0 + $0x28] sm:$0xff]  ;;  %v29_v8 = vand.u32 2147483647, %v619_v2  ;;  %v642_v11 = vld [vmem:[%s1335_s0 + $0x30] sm:$0xff]  ;;  %v30_v12 = vand.u32 2147483647, %v625_v4 }
   0x4   :  { %v35_v9 = vsub.f32 0.0, %v27_v3  ;;  %v36_v10 = vsub.f32 0.0, %v28_v5  ;;  %v31_v13 = vand.u32 2147483647, %v631_v6  ;;  %v32_v14 = vand.u32 2147483647, %v636_v7 }
   0x5   :  { %v37_v15 = vsub.f32 0.0, %v29_v8  ;;  %v650_v18 = vld [vmem:[%s1335_s0 + $0x38] sm:$0xff]  ;;  %v33_v19 = vand.u32 2147483647, %v642_v11  ;;  %v38_v20 = vsub.f32 0.0, %v30_v12  ;;  %v659_v31 = vld [vmem:[%s1336_s1] sm:$0xff] }
   0x6   :  { %v43_v16 = vmul.f32 1.442695, %v35_v9  ;;  %v45_v17 = vmul.f32 1.442695, %v36_v10  ;;  %v39_v21 = vsub.f32 0.0, %v31_v13  ;;  %v40_v23 = vsub.f32 0.0, %v32_v14 }
   0x7   :  { %v34_v22 = vand.u32 2147483647, %v650_v18  ;;  %v47_v24 = vmul.f32 1.442695, %v37_v15  ;;  %v41_v25 = vsub.f32 0.0, %v33_v19  ;;  %v664_v32 = vld [vmem:[%s1336_s1 + $0x8] sm:$0xff]  ;;  %v67_v39 = vmul.f32 %v659_v31, %v609_v0 }
   0x8   :  { %527 = vpow2.f32 %v43_v16  ;;  %v49_v26 = vmul.f32 1.442695, %v38_v20  ;;  %v51_v27 = vmul.f32 1.442695, %v39_v21  ;;  %v53_v29 = vmul.f32 1.442695, %v40_v23 }
   0x9   :  { %529 = vpow2.f32 %v45_v17  ;;  %v42_v28 = vsub.f32 0.0, %v34_v22  ;;  %v55_v33 = vmul.f32 1.442695, %v41_v25  ;;  %v59_v34 = vmax.f32 %v609_v0, 0.0  ;;  %v672_v36 = vld [vmem:[%s1336_s1 + $0x10] sm:$0xff]  ;;  %v677_v37 = vld [vmem:[%s1336_s1 + $0x18] sm:$0xff] }
   0xa   :  { %531 = vpow2.f32 %v47_v24  ;;  %v60_v38 = vmax.f32 %v614_v1, 0.0  ;;  %v68_v40 = vmul.f32 %v664_v32, %v614_v1  ;;  %v61_v41 = vmax.f32 %v619_v2, 0.0  ;;  %v703_v51 = vld [vmem:[%s1336_s1 + $0x20] sm:$0xff]  ;;  %v708_v52 = vld [vmem:[%s1336_s1 + $0x28] sm:$0xff]  ;;  %v713_v53 = vld [vmem:[%s1336_s1 + $0x30] sm:$0xff] }
   0xb   :  { %533 = vpow2.f32 %v49_v26  ;;  %v69_v42 = vmul.f32 %v672_v36, %v619_v2  ;;  %v70_v43 = vmul.f32 %v677_v37, %v625_v4  ;;  %v57_v44 = vmul.f32 1.442695, %v42_v28  ;;  %v722_v57 = vld [vmem:[%s1336_s1 + $0x38] sm:$0xff] }
   0xc   :  { %535 = vpow2.f32 %v51_v27  ;;  %v62_v45 = vmax.f32 %v625_v4, 0.0  ;;  %v63_v47 = vmax.f32 %v631_v6, 0.0  ;;  %v64_v54 = vmax.f32 %v636_v7, 0.0 }
   0xd   :  { %537 = vpow2.f32 %v53_v29  ;;  %v65_v55 = vmax.f32 %v642_v11, 0.0  ;;  %v71_v58 = vmul.f32 %v703_v51, %v631_v6  ;;  %v72_v59 = vmul.f32 %v708_v52, %v636_v7 }
   0xe   :  { %v654_v30 = vpop.eup %527  ;;  %539 = vpow2.f32 %v55_v33  ;;  %v73_v60 = vmul.f32 %v713_v53, %v642_v11  ;;  %v735_v62 = vmul.f32 %v722_v57, %v650_v18  ;;  %v737_v63 = vsub.f32 %v59_v34, %v67_v39 }
   0xf   :  { %v667_v35 = vpop.eup %529  ;;  %v691_v46 = vadd.f32 1.0, %v654_v30  ;;  %v86_v48 = vmul.f32 -0.5, %v654_v30  ;;  %v89_v3 = vand.u32 2147483647, %v654_v30  ;;  %v750_v15 = vsub.f32 %v60_v38, %v68_v40 }
  0x10   :  { %v696_v49 = vadd.f32 1.0, %v667_v35  ;;  %v698_v50 = vpop.eup %531  ;;  %1349 = vst [vmem:[#allocation2_spill] sm:$0xff] %v735_v62  ;;  %v95_v5 = vmul.f32 -0.5, %v667_v35  ;;  %v98_v10 = vand.u32 2147483647, %v667_v35  ;;  %v752_v16 = vsub.f32 %v61_v41, %v69_v42 }
  0x11   :  { %541 = vlog2.f32 %v691_v46  ;;  %v731_v61 = vpop.eup %533  ;;  %1350 = vst [vmem:[#allocation3_spill] sm:$0xff] %v737_v63  ;;  %v87_v9 = vadd.f32 1.0, %v86_v48  ;;  %v745_v12 = vadd.f32 1.0, %v698_v50  ;;  %v104_v13 = vmul.f32 -0.5, %v698_v50 }
  0x12   :  { %543 = vlog2.f32 %v696_v49  ;;  %v741_v8 = vpop.eup %535  ;;  %1351 = vst [vmem:[#allocation4_spill] sm:$0xff] %v750_v15  ;;  %v754_v17 = vsub.f32 %v62_v45, %v70_v43  ;;  %v113_v19 = vmul.f32 -0.5, %v731_v61  ;;  %v759_v21 = vsub.f32 %v63_v47, %v71_v58 }
  0x13   :  { %v748_v14 = vpop.eup %537  ;;  %1352 = vst [vmem:[#allocation5_spill] sm:$0xff] %v752_v16  ;;  %v761_v22 = vsub.f32 %v64_v54, %v72_v59  ;;  %545 = vlog2.f32 %v745_v12  ;;  %v122_v23 = vmul.f32 -0.5, %v741_v8  ;;  %v765_v25 = vsub.f32 %v65_v55, %v73_v60 }
  0x14   :  { %1353 = vst [vmem:[#allocation6_spill] sm:$0xff] %v754_v17  ;;  %v757_v20 = vpop.eup %539  ;;  %547 = vpow2.f32 %v57_v44  ;;  %v96_v26 = vadd.f32 1.0, %v95_v5  ;;  %v768_v27 = vadd.f32 1.0, %v731_v61  ;;  %v771_v29 = vmul.f32 %v654_v30, %v87_v9 }
  0x15   :  { %1354 = vst [vmem:[#allocation7_spill] sm:$0xff] %v759_v21  ;;  %vm773_vm0 = vcmp.lt.f32.partialorder %v89_v3, 0.0004427343  ;;  %v1358_v33 = vmov 0  ;;  %vm777_vm1 = vcmp.lt.f32.partialorder %v98_v10, 0.0004427343  ;;  %vm176_vm2 = vweird.f32 %v691_v46 }
  0x16   :  { %1355 = vst [vmem:[#allocation8_spill] sm:$0xff] %v761_v22  ;;  %v1359_v33 = vsel %vm773_vm0, 4294967295, %v1358_v33  ;;  %v1361_v34 = vmov 0  ;;  %v105_v38 = vadd.f32 1.0, %v104_v13  ;;  %549 = vlog2.f32 %v768_v27 }
  0x17   :  { %v542_v24 = vpop.eup %541  ;;  %1356 = vst [vmem:[#allocation9_spill] sm:$0xff] %v765_v25  ;;  %v1362_v34 = vsel %vm777_vm1, 4294967295, %v1361_v34  ;;  %v114_v39 = vadd.f32 1.0, %v113_v19  ;;  %v783_v40 = vadd.f32 1.0, %v741_v8  ;;  %v131_v41 = vmul.f32 -0.5, %v748_v14 }
  0x18   :  { %v544_v28 = vpop.eup %543  ;;  %1357 = vst [vmem:[#allocation10_spill] sm:$0xff] %v771_v29  ;;  %v786_v42 = vmul.f32 0.6931472, %v542_v24  ;;  %v123_v43 = vadd.f32 1.0, %v122_v23  ;;  %v790_v44 = vadd.f32 1.0, %v748_v14  ;;  %v795_v47 = vmul.f32 %v667_v35, %v96_v26 }
  0x19   :  { %1360 = vst [vmem:[#allocation11_spill] sm:$0xff] %v1359_v33  ;;  %v792_v45 = vmul.f32 0.6931472, %v544_v28  ;;  %551 = vlog2.f32 %v783_v40  ;;  %v799_v48 = vadd.f32 1.0, %v757_v20  ;;  %v546_v54 = vpop.eup %545  ;;  %v802_v55 = vmul.f32 %v698_v50, %v105_v38 }
  0x1a   :  { %1363 = vst [vmem:[#allocation12_spill] sm:$0xff] %v1362_v34  ;;  %553 = vlog2.f32 %v790_v44  ;;  %v807_v60 = vpop.eup %547  ;;  %v810_v35 = vmul.f32 %v731_v61, %v114_v39  ;;  %v132_v3 = vadd.f32 1.0, %v131_v41  ;;  %v819_v10 = vmul.f32 %v741_v8, %v123_v43 }
  0x1b   :  { %1364 = vst [vmem:[#allocation13_spill] sm:$0xff] %v786_v42  ;;  %555 = vlog2.f32 %v799_v48  ;;  %v140_v13 = vmul.f32 -0.5, %v757_v20  ;;  %v827_v24 = vmul.f32 0.6931472, %v546_v54  ;;  %v149_v26 = vmul.f32 -0.5, %v807_v60 }
  0x1c   :  { %1365 = vst [vmem:[#allocation14_spill] sm:$0xff] %v792_v45  ;;  %557 = vrcp.f32 %v691_v46  ;;  %v550_v19 = vpop.eup %549  ;;  %v832_v28 = vadd.f32 1.0, %v807_v60  ;;  %v180_v38 = vand.u32 2147483647, %v691_v46  ;;  %v182_v39 = vand.u32 2147483648, %v691_v46 }
  0x1d   :  { %1366 = vst [vmem:[#allocation15_spill] sm:$0xff] %v795_v47  ;;  %559 = vrcp.f32 %v696_v49  ;;  %v195_v41 = vand.u32 2147483647, %v696_v49  ;;  %v840_v9 = vmul.f32 %v748_v14, %v132_v3  ;;  %v197_v23 = vand.u32 2147483648, %v696_v49 }
  0x1e   :  { %1367 = vst [vmem:[#allocation16_spill] sm:$0xff] %v802_v55  ;;  %561 = vrcp.f32 %v745_v12  ;;  %v847_v5 = vmul.f32 0.6931472, %v550_v19  ;;  %v849_v59 = vadd.f32 1.0, %v140_v13  ;;  %v855_v3 = vadd.f32 1.0, %v149_v26 }
  0x1f   :  { %1368 = vst [vmem:[#allocation17_spill] sm:$0xff] %v810_v35  ;;  %v837_v43 = vpop.eup %551  ;;  %563 = vlog2.f32 %v832_v28  ;;  %vm191_vm3 = vweird.f32 %v696_v49  ;;  %v210_v54 = vand.u32 2147483647, %v745_v12  ;;  %vm860_vm4 = vcmp.eq.f32.partialorder %v180_v38, 8.507059e+37 }
  0x20   :  { %1369 = vst [vmem:[#allocation18_spill] sm:$0xff] %v819_v10  ;;  %v845_v56 = vpop.eup %553  ;;  %v183_v13 = vor.u32 1.1754944e-38, %v182_v39  ;;  %vm864_vm5 = vcmp.eq.f32.partialorder %v195_v41, 8.507059e+37  ;;  %v212_v58 = vand.u32 2147483648, %v745_v12  ;;  %565 = vrcp.f32 %v768_v27 }
  0x21   :  { %1370 = vst [vmem:[#allocation19_spill] sm:$0xff] %v840_v9  ;;  %v853_v30 = vpop.eup %555  ;;  %v198_v17 = vor.u32 1.1754944e-38, %v197_v23  ;;  %vm206_vm6 = vweird.f32 %v745_v12  ;;  %vm221_vm7 = vweird.f32 %v768_v27  ;;  %vm874_vm9 = vcmp.eq.f32.partialorder %v210_v54, 8.507059e+37 }
  0x22   :  { %1371 = vst [vmem:[#allocation20_spill] sm:$0xff] %v847_v5  ;;  %v558_v25 = vpop.eup %557  ;;  %v225_v41 = vand.u32 2147483647, %v768_v27  ;;  %v227_v47 = vand.u32 2147483648, %v768_v27  ;;  %567 = vrcp.f32 %v783_v40  ;;  %v213_v42 = vor.u32 1.1754944e-38, %v212_v58 }
  0x23   :  { %v560_v26 = vpop.eup %559  ;;  %v172_v21 = vmul.f32 %v558_v25, %v691_v46  ;;  %vm177_vm8 = vweird.f32 %v558_v25  ;;  %v240_v54 = vand.u32 2147483647, %v783_v40  ;;  %v242_v33 = vand.u32 2147483648, %v783_v40 }
  0x24   :  { %v187_v38 = vmul.f32 %v560_v26, %v696_v49  ;;  %v562_v16 = vpop.eup %561  ;;  %vm192_vm10 = vweird.f32 %v560_v26  ;;  %569 = vrcp.f32 %v790_v44  ;;  %vm891_vm12 = vmor %vm176_vm2, %vm177_vm8  ;;  %vm895_vm14 = vcmp.eq.f32.partialorder %v225_v41, 8.507059e+37 }
  0x25   :  { %v173_v45 = vsub.f32 1.0, %v172_v21  ;;  %v881_v23 = vpop.eup %563  ;;  %v202_v15 = vmul.f32 %v562_v16, %v745_v12  ;;  %vm207_vm13 = vweird.f32 %v562_v16  ;;  %vm902_vm15 = vmor %vm191_vm3, %vm192_vm10  ;;  %vm251_vm8 = vweird.f32 %v790_v44 }
  0x26   :  { %v188_v34 = vsub.f32 1.0, %v187_v38  ;;  %v566_v21 = vpop.eup %565  ;;  %vm908_vm11 = vcmp.eq.f32.partialorder %v240_v54, 8.507059e+37  ;;  %vm918_vm3 = vmor %vm206_vm6, %vm207_vm13  ;;  %571 = vrcp.f32 %v799_v48  ;;  %vm266_vm10 = vweird.f32 %v799_v48 }
  0x27   :  { %v174_v29 = vmul.f32 %v558_v25, %v173_v45  ;;  %v203_v9 = vsub.f32 1.0, %v202_v15  ;;  %v228_v45 = vor.u32 1.1754944e-38, %v227_v47  ;;  %v217_v46 = vmul.f32 %v566_v21, %v768_v27 }
  0x28   :  { %v189_v38 = vmul.f32 %v560_v26, %v188_v34  ;;  %vm222_vm2 = vweird.f32 %v566_v21  ;;  %v243_v47 = vor.u32 1.1754944e-38, %v242_v33  ;;  %v568_v35 = vpop.eup %567  ;;  %573 = vrcp.f32 %v832_v28 }
  0x29   :  { %v175_v62 = vadd.f32 %v558_v25, %v174_v29  ;;  %v204_v34 = vmul.f32 %v562_v16, %v203_v9  ;;  %v255_v29 = vand.u32 2147483647, %v790_v44  ;;  %v257_v9 = vand.u32 2147483648, %v790_v44 }
  0x2a   :  { %v190_v15 = vadd.f32 %v560_v26, %v189_v38  ;;  %v218_v38 = vsub.f32 1.0, %v217_v46  ;;  %v232_v55 = vmul.f32 %v568_v35, %v783_v40  ;;  %vm237_vm6 = vweird.f32 %v568_v35 }
  0x2b   :  { %v179_v49 = vsel %vm891_vm12, %v558_v25, %v175_v62  ;;  %v205_v54 = vadd.f32 %v562_v16, %v204_v34  ;;  %v570_v62 = vpop.eup %569  ;;  %vm941_vm12 = vmor %vm221_vm7, %vm222_vm2  ;;  %vm1392_vm7 = vweird.f32 %v783_v40 }
  0x2c   :  { %v194_v33 = vsel %vm902_vm15, %v560_v26, %v190_v15  ;;  %v930_v63 = vsel %vm860_vm4, %v183_v13, %v179_v49  ;;  %v219_v25 = vmul.f32 %v566_v21, %v218_v38  ;;  %v233_v46 = vsub.f32 1.0, %v232_v55  ;;  %v572_v55 = vpop.eup %571  ;;  %vm960_vm13 = vmor %vm1392_vm7, %vm237_vm6 }
  0x2d   :  { %v934_v12 = vsel %vm864_vm5, %v198_v17, %v194_v33  ;;  %v209_v10 = vsel %vm918_vm3, %v562_v16, %v205_v54  ;;  %v247_v19 = vmul.f32 %v570_v62, %v790_v44  ;;  %vm946_vm4 = vcmp.eq.f32.partialorder %v255_v29, 8.507059e+37 }
  0x2e   :  { %v214_v17 = vsel %vm874_vm9, %v213_v42, %v209_v10  ;;  %v220_v22 = vadd.f32 %v566_v21, %v219_v25  ;;  %vm252_vm5 = vweird.f32 %v570_v62  ;;  %v270_v16 = vand.u32 2147483647, %v799_v48 }
  0x2f   :  { %v234_v5 = vmul.f32 %v568_v35, %v233_v46  ;;  %v248_v27 = vsub.f32 1.0, %v247_v19  ;;  %v272_v15 = vand.u32 2147483648, %v799_v48  ;;  %v258_v42 = vor.u32 1.1754944e-38, %v257_v9  ;;  %vm976_vm2 = vmor %vm251_vm8, %vm252_vm5  ;;  %v574_v19 = vpop.eup %573 }
  0x30   :  { %v224_v34 = vsel %vm941_vm12, %v566_v21, %v220_v22  ;;  %vm964_vm9 = vcmp.eq.f32.partialorder %v270_v16, 8.507059e+37  ;;  %v285_v49 = vand.u32 2147483647, %v832_v28  ;;  %v262_v54 = vmul.f32 %v572_v55, %v799_v48 }
  0x31   :  { %v235_v38 = vadd.f32 %v568_v35, %v234_v5  ;;  %v249_v33 = vmul.f32 %v570_v62, %v248_v27  ;;  %vm281_vm15 = vweird.f32 %v832_v28  ;;  %v229_v40 = vsel %vm895_vm14, %v228_v45, %v224_v34 }
  0x32   :  { %vm267_vm3 = vweird.f32 %v572_v55  ;;  %v273_v9 = vor.u32 1.1754944e-38, %v272_v15  ;;  %v287_v25 = vand.u32 2147483648, %v832_v28  ;;  %v263_v46 = vsub.f32 1.0, %v262_v54 }
  0x33   :  { %v239_v10 = vsel %vm960_vm13, %v568_v35, %v235_v38  ;;  %v250_v26 = vadd.f32 %v570_v62, %v249_v33  ;;  %vm291_vm6 = vcmp.ge.f32.partialorder %v609_v0, 0.0  ;;  %vm986_vm14 = vcmp.eq.f32.partialorder %v285_v49, 8.507059e+37 }
  0x34   :  { %v244_v58 = vsel %vm908_vm11, %v243_v47, %v239_v10  ;;  %v288_v45 = vor.u32 1.1754944e-38, %v287_v25  ;;  %vm292_vm8 = vcmp.ge.f32.partialorder %v614_v1, 0.0  ;;  %vm293_vm12 = vcmp.ge.f32.partialorder %v619_v2, 0.0  ;;  %vm1001_vm11 = vmor %vm266_vm10, %vm267_vm3 }
  0x35   :  { %v254_v35 = vsel %vm976_vm2, %v570_v62, %v250_v26  ;;  %v264_v22 = vmul.f32 %v572_v55, %v263_v46  ;;  %v277_v16 = vmul.f32 %v574_v19, %v832_v28  ;;  %vm282_vm13 = vweird.f32 %v574_v19 }
  0x36   :  { %v259_v41 = vsel %vm946_vm4, %v258_v42, %v254_v35  ;;  %vm296_vm2 = vcmp.ge.f32.partialorder %v636_v7, 0.0  ;;  %vm297_vm5 = vcmp.ge.f32.partialorder %v642_v11, 0.0  ;;  %vm298_vm7 = vcmp.ge.f32.partialorder %v650_v18, 0.0  ;;  %vm1026_vm10 = vmor %vm281_vm15, %vm282_vm13 }
  0x37   :  { %v265_v62 = vadd.f32 %v572_v55, %v264_v22  ;;  %v299_v13 = vsub.f32 1.0, %v930_v63  ;;  %v278_v5 = vsub.f32 1.0, %v277_v16  ;;  %v300_v27 = vsub.f32 1.0, %v934_v12 }
  0x38   :  { %v301_v48 = vsub.f32 1.0, %v214_v17  ;;  %v302_v15 = vsub.f32 1.0, %v229_v40  ;;  %v303_v39 = vsub.f32 1.0, %v244_v58  ;;  %v304_v42 = vsub.f32 1.0, %v259_v41 }
  0x39   :  { %v269_v34 = vsel %vm1001_vm11, %v572_v55, %v265_v62  ;;  %v307_v49 = vsel %vm291_vm6, %v930_v63, %v299_v13  ;;  %v279_v33 = vmul.f32 %v574_v19, %v278_v5  ;;  %v308_v54 = vsel %vm292_vm8, %v934_v12, %v300_v27  ;;  %v1439_v55 = vld [vmem:[#allocation15_spill] sm:$0xff] }
  0x3a   :  { %v274_v38 = vsel %vm964_vm9, %v273_v9, %v269_v34  ;;  %v309_v21 = vsel %vm293_vm12, %v214_v17, %v301_v48  ;;  %vm1405_vm4 = vcmp.ge.f32.partialorder %v625_v4, 0.0  ;;  %vm1406_vm9 = vcmp.ge.f32.partialorder %v631_v6, 0.0 }
  0x3b   :  { %v305_v0 = vsub.f32 1.0, %v274_v38  ;;  %v310_v63 = vsel %vm1405_vm4, %v229_v40, %v302_v15  ;;  %v311_v29 = vsel %vm1406_vm9, %v244_v58, %v303_v39  ;;  %v312_v1 = vsel %vm296_vm2, %v259_v41, %v304_v42 }
  0x3c   :  { %v280_v12 = vadd.f32 %v574_v19, %v279_v33  ;;  %v315_v2 = vmul.f32 %v307_v49, %v659_v31  ;;  %v316_v17 = vmul.f32 %v308_v54, %v664_v32  ;;  %v317_v28 = vmul.f32 %v309_v21, %v672_v36 }
  0x3d   :  { %v313_v9 = vsel %vm297_vm5, %v274_v38, %v305_v0  ;;  %v318_v25 = vmul.f32 %v310_v63, %v677_v37  ;;  %v319_v4 = vmul.f32 %v311_v29, %v703_v51  ;;  %v320_v6 = vmul.f32 %v312_v1, %v708_v52 }
  0x3e   :  { %v284_v7 = vsel %vm1026_vm10, %v574_v19, %v280_v12  ;;  %v321_v40 = vmul.f32 %v313_v9, %v713_v53  ;;  %v323_v10 = vsub.f32 1.0, %v659_v31  ;;  %v324_v26 = vsub.f32 1.0, %v664_v32 }
  0x3f   :  { %v289_v46 = vsel %vm986_vm14, %v288_v45, %v284_v7  ;;  %v325_v11 = vsub.f32 1.0, %v672_v36  ;;  %v1348_v58 = vsub.f32 1.0, %v677_v37  ;;  %v1347_v35 = vsub.f32 1.0, %v703_v51 }
  0x40   :  { %v306_v22 = vsub.f32 1.0, %v289_v46  ;;  %v1346_v41 = vsub.f32 1.0, %v708_v52  ;;  %v1344_v19 = vsub.f32 1.0, %v713_v53  ;;  %v1345_v47 = vsub.f32 1.0, %v722_v57 }
  0x41   :  { %v331_v16 = vsub.f32 1.0, %v307_v49  ;;  %v332_v62 = vsub.f32 1.0, %v308_v54  ;;  %v333_v13 = vsub.f32 1.0, %v309_v21  ;;  %v334_v5 = vsub.f32 1.0, %v310_v63 }
  0x42   :  { %v1407_v44 = vand.u32 2147483647, %v698_v50  ;;  %v314_v27 = vsel %vm298_vm7, %v289_v46, %v306_v22  ;;  %v335_v48 = vsub.f32 1.0, %v311_v29  ;;  %v336_v15 = vsub.f32 1.0, %v312_v1 }
  0x43   :  { %v337_v34 = vsub.f32 1.0, %v313_v9  ;;  %v1410_v39 = vand.u32 2147483647, %v731_v61  ;;  %v1413_v49 = vand.u32 2147483647, %v741_v8  ;;  %v322_v38 = vmul.f32 %v314_v27, %v722_v57 }
  0x44   :  { %vm1059_vm15 = vcmp.lt.f32.partialorder %v1407_v44, 0.0004427343  ;;  %v338_v33 = vsub.f32 1.0, %v314_v27  ;;  %v339_v54 = vmul.f32 %v331_v16, %v323_v10  ;;  %v340_v21 = vmul.f32 %v332_v62, %v324_v26 }
  0x45   :  { %vm1067_vm3 = vcmp.lt.f32.partialorder %v1410_v39, 0.0004427343  ;;  %vm1073_vm6 = vcmp.lt.f32.partialorder %v1413_v49, 0.0004427343  ;;  %v1416_v61 = vand.u32 2147483647, %v748_v14  ;;  %v341_v63 = vmul.f32 %v333_v13, %v325_v11 }
  0x46   :  { %v1419_v8 = vand.u32 2147483647, %v757_v20  ;;  %v342_v29 = vmul.f32 %v334_v5, %v1348_v58  ;;  %v343_v1 = vmul.f32 %v335_v48, %v1347_v35  ;;  %v344_v14 = vmul.f32 %v336_v15, %v1346_v41 }
  0x47   :  { %vm1084_vm14 = vcmp.lt.f32.partialorder %v1416_v61, 0.0004427343  ;;  %v345_v12 = vmul.f32 %v337_v34, %v1344_v19  ;;  %v346_v9 = vmul.f32 %v338_v33, %v1345_v47  ;;  %v347_v7 = vadd.f32 %v339_v54, %v315_v2 }
  0x48   :  { %vm1090_vm8 = vcmp.lt.f32.partialorder %v1419_v8, 0.0004427343  ;;  %v348_v46 = vadd.f32 %v340_v21, %v316_v17  ;;  %v349_v22 = vadd.f32 %v341_v63, %v317_v28  ;;  %v350_v16 = vadd.f32 %v342_v29, %v318_v25  ;;  %v1428_v29 = vld [vmem:[#allocation18_spill] sm:$0xff] }
  0x49   :  { %v351_v62 = vadd.f32 %v343_v1, %v319_v4  ;;  %v352_v13 = vadd.f32 %v344_v14, %v320_v6  ;;  %v353_v44 = vadd.f32 %v345_v12, %v321_v40  ;;  %v354_v5 = vadd.f32 %v346_v9, %v322_v38  ;;  %v1431_v12 = vld [vmem:[#allocation19_spill] sm:$0xff] }
  0x4a   :  { %v355_v27 = vsub.f32 1.0, %v347_v7  ;;  %v356_v39 = vsub.f32 1.0, %v348_v46  ;;  %v357_v48 = vsub.f32 1.0, %v349_v22  ;;  %v358_v49 = vsub.f32 1.0, %v350_v16  ;;  %v1432_v7 = vld [vmem:[#allocation3_spill] sm:$0xff]  ;;  %v1434_v22 = vld [vmem:[#allocation10_spill] sm:$0xff] }
  0x4b   :  { %v359_v61 = vsub.f32 1.0, %v351_v62  ;;  %v360_v15 = vsub.f32 1.0, %v352_v13  ;;  %v121_v8 = vmul.f32 0.6931472, %v837_v43  ;;  %v361_v34 = vsub.f32 1.0, %v353_v44  ;;  %v1435_v16 = vld [vmem:[#allocation13_spill] sm:$0xff] }
  0x4c   :  { %v1107_v19 = vmax.f32 %v355_v27, 0.0  ;;  %v1109_v33 = vmax.f32 %v356_v39, 0.0  ;;  %v142_v2 = vmul.f32 %v757_v20, %v849_v59  ;;  %v362_v17 = vsub.f32 1.0, %v354_v5  ;;  %v1422_v20 = vld [vmem:[#allocation16_spill] sm:$0xff]  ;;  %v1440_v5 = vld [vmem:[#allocation14_spill] sm:$0xff] }
  0x4d   :  { %v1113_v28 = vmax.f32 %v357_v48, 0.0  ;;  %v1115_v25 = vmax.f32 %v358_v49, 0.0  ;;  %v130_v4 = vmul.f32 0.6931472, %v845_v56  ;;  %v139_v6 = vmul.f32 0.6931472, %v853_v30 }
  0x4e   :  { %v1119_v40 = vmax.f32 %v359_v61, 0.0  ;;  %575 = vrsqrt.f32 %v1107_v19  ;;  %v148_v43 = vmul.f32 0.6931472, %v881_v23  ;;  %v151_v38 = vmul.f32 %v807_v60, %v855_v3  ;;  %v1426_v3 = vld [vmem:[#allocation20_spill] sm:$0xff]  ;;  %v1427_v23 = vld [vmem:[#allocation17_spill] sm:$0xff]  ;;  %v1443_v61 = vld [vmem:[#allocation6_spill] sm:$0xff] }
  0x4f   :  { %v1125_v54 = vmax.f32 %v360_v15, 0.0  ;;  %577 = vrsqrt.f32 %v1109_v33  ;;  %v109_v56 = vsel %vm1059_vm15, %v1422_v20, %v827_v24  ;;  %v1423_v30 = vand.u32 2147483647, %v807_v60  ;;  %v1429_v60 = vld [vmem:[#allocation2_spill] sm:$0xff]  ;;  %v1437_v13 = vld [vmem:[#allocation4_spill] sm:$0xff]  ;;  %v1442_v48 = vld [vmem:[#allocation5_spill] sm:$0xff] }
  0x50   :  { %v1138_v21 = vmax.f32 %v361_v34, 0.0  ;;  %579 = vrsqrt.f32 %v1113_v28  ;;  %v118_v63 = vsel %vm1067_vm3, %v1427_v23, %v1426_v3  ;;  %v127_v45 = vsel %vm1073_vm6, %v1428_v29, %v121_v8  ;;  %v1444_v8 = vld [vmem:[#allocation7_spill] sm:$0xff] }
  0x51   :  { %vm1134_vm12 = vcmp.lt.f32.partialorder %v1423_v30, 0.0004427343  ;;  %v1148_v24 = vmax.f32 %v362_v17, 0.0  ;;  %581 = vrsqrt.f32 %v1115_v25  ;;  %v1430_v1 = vmax.f32 %v650_v18, 0.0  ;;  %v1445_v17 = vld [vmem:[#allocation8_spill] sm:$0xff] }
  0x52   :  { %v136_v9 = vsel %vm1084_vm14, %v1431_v12, %v130_v4  ;;  %v145_v42 = vsel %vm1090_vm8, %v142_v2, %v139_v6  ;;  %583 = vrsqrt.f32 %v1119_v40  ;;  %v154_v50 = vsel %vm1134_vm12, %v151_v38, %v148_v43  ;;  %v1446_v6 = vld [vmem:[#allocation9_spill] sm:$0xff] }
  0x53   :  { %v82_v14 = vsub.f32 %v1430_v1, %v1429_v60  ;;  %v1436_v62 = vsel %vm773_vm0, %v1434_v22, %v1435_v16  ;;  %v1441_v0 = vsel %vm777_vm1, %v1439_v55, %v1440_v5  ;;  %585 = vrsqrt.f32 %v1125_v54 }
  0x54   :  { %v1168_v18 = vadd.f32 %v1436_v62, %v1432_v7  ;;  %v1176_v27 = vadd.f32 %v1441_v0, %v1437_v13  ;;  %v576_v39 = vpop.eup %575  ;;  %v1180_v49 = vadd.f32 %v109_v56, %v1442_v48  ;;  %v1183_v15 = vadd.f32 %v118_v63, %v1443_v61 }
  0x55   :  { %v1186_v34 = vadd.f32 %v127_v45, %v1444_v8  ;;  %587 = vrsqrt.f32 %v1138_v21  ;;  %v578_v2 = vpop.eup %577  ;;  %v1190_v4 = vadd.f32 %v136_v9, %v1445_v17  ;;  %v1193_v43 = vadd.f32 %v145_v42, %v1446_v6 }
  0x56   :  { %v372_v38 = vmul.f32 %v576_v39, %v1107_v19  ;;  %589 = vrsqrt.f32 %v1148_v24  ;;  %v580_v20 = vpop.eup %579  ;;  %v1197_v56 = vadd.f32 %v154_v50, %v82_v14  ;;  %vm378_vm0 = vcmp.eq.f32.partialorder %v1107_v19, inf }
  0x57   :  { %v381_v30 = vand.u32 2147483648, %v1107_v19  ;;  %v384_v59 = vmul.f32 %v578_v2, %v1109_v33  ;;  %v582_v3 = vpop.eup %581  ;;  %vm390_vm1 = vcmp.eq.f32.partialorder %v1109_v33, inf  ;;  %v393_v63 = vand.u32 2147483648, %v1109_v33 }
  0x58   :  { %v373_v23 = vmul.f32 %v576_v39, %v372_v38  ;;  %v396_v29 = vmul.f32 %v580_v20, %v1113_v28  ;;  %v405_v45 = vand.u32 2147483648, %v1113_v28  ;;  %v584_v60 = vpop.eup %583  ;;  %vm402_vm5 = vcmp.eq.f32.partialorder %v1113_v28, inf }
  0x59   :  { %v385_v1 = vmul.f32 %v578_v2, %v384_v59  ;;  %v408_v14 = vmul.f32 %v582_v3, %v1115_v25  ;;  %v417_v12 = vand.u32 2147483648, %v1115_v25  ;;  %v429_v9 = vand.u32 2147483648, %v1119_v40  ;;  %v586_v42 = vpop.eup %585 }
  0x5a   :  { %v374_v50 = vmul.f32 0.5, %v373_v23  ;;  %vm380_vm7 = vcmp.eq.f32.partialorder %v1107_v19, 0.0  ;;  %v397_v7 = vmul.f32 %v580_v20, %v396_v29  ;;  %vm414_vm11 = vcmp.eq.f32.partialorder %v1115_v25, inf }
  0x5b   :  { %v420_v46 = vmul.f32 %v584_v60, %v1119_v40  ;;  %v441_v22 = vand.u32 2147483648, %v1125_v54  ;;  %v588_v16 = vpop.eup %587  ;;  %v386_v62 = vmul.f32 0.5, %v385_v1  ;;  %vm392_vm13 = vcmp.eq.f32.partialorder %v1109_v33, 0.0 }
  0x5c   :  { %v409_v13 = vmul.f32 %v582_v3, %v408_v14  ;;  %vm426_vm2 = vcmp.eq.f32.partialorder %v1119_v40, inf  ;;  %v432_v44 = vmul.f32 %v586_v42, %v1125_v54  ;;  %v453_v55 = vand.u32 2147483648, %v1138_v21  ;;  %v590_v5 = vpop.eup %589 }
  0x5d   :  { %v375_v0 = vsub.f32 1.5, %v374_v50  ;;  %v398_v48 = vmul.f32 0.5, %v397_v7  ;;  %vm404_vm10 = vcmp.eq.f32.partialorder %v1113_v28, 0.0  ;;  %vm416_vm4 = vcmp.eq.f32.partialorder %v1115_v25, 0.0 }
  0x5e   :  { %v421_v61 = vmul.f32 %v584_v60, %v420_v46  ;;  %vm438_vm9 = vcmp.eq.f32.partialorder %v1125_v54, inf  ;;  %v444_v8 = vmul.f32 %v588_v16, %v1138_v21  ;;  %v387_v17 = vsub.f32 1.5, %v386_v62 }
  0x5f   :  { %v410_v6 = vmul.f32 0.5, %v409_v13  ;;  %vm428_vm15 = vcmp.eq.f32.partialorder %v1119_v40, 0.0  ;;  %v433_v38 = vmul.f32 %v586_v42, %v432_v44  ;;  %vm450_vm3 = vcmp.eq.f32.partialorder %v1138_v21, inf }
  0x60   :  { %v456_v59 = vmul.f32 %v590_v5, %v1148_v24  ;;  %v376_v23 = vmul.f32 %v576_v39, %v375_v0  ;;  %v399_v29 = vsub.f32 1.5, %v398_v48  ;;  %v422_v1 = vmul.f32 0.5, %v421_v61 }
  0x61   :  { %vm440_vm6 = vcmp.eq.f32.partialorder %v1125_v54, 0.0  ;;  %v445_v14 = vmul.f32 %v588_v16, %v444_v8  ;;  %vm452_vm14 = vcmp.eq.f32.partialorder %v1138_v21, 0.0  ;;  %v388_v50 = vmul.f32 %v578_v2, %v387_v17 }
  0x62   :  { %v411_v7 = vsub.f32 1.5, %v410_v6  ;;  %v434_v46 = vmul.f32 0.5, %v433_v38  ;;  %v457_v62 = vmul.f32 %v590_v5, %v456_v59  ;;  %v377_v13 = vmul.f32 %v376_v23, %v1107_v19 }
  0x63   :  { %v400_v47 = vmul.f32 %v580_v20, %v399_v29  ;;  %v423_v44 = vsub.f32 1.5, %v422_v1  ;;  %v446_v41 = vmul.f32 0.5, %v445_v14  ;;  %v389_v35 = vmul.f32 %v388_v50, %v1109_v33 }
  0x64   :  { %v412_v58 = vmul.f32 %v582_v3, %v411_v7  ;;  %v435_v39 = vsub.f32 1.5, %v434_v46  ;;  %v458_v0 = vmul.f32 0.5, %v457_v62  ;;  %v379_v48 = vsel %vm378_vm0, %v1107_v19, %v377_v13 }
  0x65   :  { %v401_v61 = vmul.f32 %v400_v47, %v1113_v28  ;;  %v424_v2 = vmul.f32 %v584_v60, %v423_v44  ;;  %v447_v8 = vsub.f32 1.5, %v446_v41  ;;  %v391_v17 = vsel %vm390_vm1, %v1109_v33, %v389_v35 }
  0x66   :  { %v413_v20 = vmul.f32 %v412_v58, %v1115_v25  ;;  %v436_v6 = vmul.f32 %v586_v42, %v435_v39  ;;  %vm462_vm8 = vcmp.eq.f32.partialorder %v1148_v24, inf  ;;  %vm464_vm12 = vcmp.eq.f32.partialorder %v1148_v24, 0.0 }
  0x67   :  { %v403_v3 = vsel %vm402_vm5, %v1113_v28, %v401_v61  ;;  %v425_v38 = vmul.f32 %v424_v2, %v1119_v40  ;;  %v448_v59 = vmul.f32 %v588_v16, %v447_v8  ;;  %v382_v41 = vsel %vm380_vm7, %v381_v30, %v379_v48 }
  0x68   :  { %v415_v58 = vsel %vm414_vm11, %v1115_v25, %v413_v20  ;;  %v437_v35 = vmul.f32 %v436_v6, %v1125_v54  ;;  %v459_v47 = vsub.f32 1.5, %v458_v0  ;;  %v394_v60 = vsel %vm392_vm13, %v393_v63, %v391_v17 }
  0x69   :  { %v427_v42 = vsel %vm426_vm2, %v1119_v40, %v425_v38  ;;  %v449_v16 = vmul.f32 %v448_v59, %v1138_v21  ;;  %v465_v30 = vand.u32 2147483648, %v1148_v24  ;;  %v406_v23 = vsel %vm404_vm10, %v405_v45, %v403_v3 }
  0x6a   :  { %v418_v29 = vsel %vm416_vm4, %v417_v12, %v415_v58  ;;  %v439_v63 = vsel %vm438_vm9, %v1125_v54, %v437_v35  ;;  %v460_v1 = vmul.f32 %v590_v5, %v459_v47  ;;  %v430_v14 = vsel %vm428_vm15, %v429_v9, %v427_v42 }
  0x6b   :  { %v451_v50 = vsel %vm450_vm3, %v1138_v21, %v449_v16  ;;  %v467_v45 = vmul.f32 %v382_v41, %v1107_v19  ;;  %v483_v7 = vmul.f32 0.25, %v659_v31  ;;  %v442_v12 = vsel %vm440_vm6, %v441_v22, %v439_v63 }
  0x6c   :  { %v454_v5 = vsel %vm452_vm14, %v453_v55, %v451_v50  ;;  %v461_v9 = vmul.f32 %v460_v1, %v1148_v24  ;;  %v468_v46 = vmul.f32 %v394_v60, %v1109_v33  ;;  %v469_v62 = vmul.f32 %v406_v23, %v1113_v28 }
  0x6d   :  { %v470_v19 = vmul.f32 %v418_v29, %v1115_v25  ;;  %v484_v13 = vmul.f32 0.25, %v664_v32  ;;  %v485_v44 = vmul.f32 0.25, %v672_v36  ;;  %v471_v39 = vmul.f32 %v430_v14, %v1119_v40 }
  0x6e   :  { %v486_v22 = vmul.f32 0.25, %v677_v37  ;;  %v487_v0 = vmul.f32 0.25, %v703_v51  ;;  %v488_v55 = vmul.f32 0.25, %v708_v52  ;;  %v463_v33 = vsel %vm462_vm8, %v1148_v24, %v461_v9 }
  0x6f   :  { %v472_v28 = vmul.f32 %v442_v12, %v1125_v54  ;;  %v473_v25 = vmul.f32 %v454_v5, %v1138_v21  ;;  %v475_v48 = vmul.f32 %v467_v45, %v1168_v18  ;;  %v476_v61 = vmul.f32 %v468_v46, %v1176_v27 }
  0x70   :  { %v491_v40 = vmul.f32 0.75, %v323_v10  ;;  %v492_v2 = vmul.f32 0.75, %v324_v26  ;;  %v493_v8 = vmul.f32 0.75, %v325_v11  ;;  %v477_v17 = vmul.f32 %v469_v62, %v1180_v49 }
  0x71   :  { %v478_v20 = vmul.f32 %v470_v19, %v1183_v15  ;;  %v1447_v54 = vsub.f32 1.0, %v677_v37  ;;  %v1448_v18 = vsub.f32 1.0, %v703_v51  ;;  %v466_v31 = vsel %vm464_vm12, %v465_v30, %v463_v33 }
  0x72   :  { %v1449_v10 = vsub.f32 1.0, %v708_v52  ;;  %v499_v26 = vadd.f32 %v491_v40, %v483_v7  ;;  %v500_v27 = vadd.f32 %v492_v2, %v484_v13  ;;  %v479_v36 = vmul.f32 %v471_v39, %v1186_v34 }
  0x73   :  { %v494_v21 = vmul.f32 0.75, %v1447_v54  ;;  %v495_v6 = vmul.f32 0.75, %v1448_v18  ;;  %v489_v11 = vmul.f32 0.25, %v713_v53  ;;  %v501_v49 = vadd.f32 %v493_v8, %v485_v44 }
  0x74   :  { %v496_v32 = vmul.f32 0.75, %v1449_v10  ;;  %v1450_v37 = vsub.f32 1.0, %v713_v53  ;;  %v507_v51 = vmul.f32 %v499_v26, %v475_v48  ;;  %v508_v59 = vmul.f32 %v500_v27, %v476_v61 }
  0x75   :  { %v502_v15 = vadd.f32 %v494_v21, %v486_v22  ;;  %v503_v38 = vadd.f32 %v495_v6, %v487_v0  ;;  %v474_v41 = vmul.f32 %v466_v31, %v1148_v24  ;;  %v480_v58 = vmul.f32 %v472_v28, %v1190_v4 }
  0x76   :  { %v497_v3 = vmul.f32 0.75, %v1450_v37  ;;  %v490_v52 = vmul.f32 0.25, %v722_v57  ;;  %v509_v35 = vmul.f32 %v501_v49, %v477_v17  ;;  %v1451_v47 = vsub.f32 1.0, %v722_v57 }
  0x77   :  { %v504_v60 = vadd.f32 %v496_v32, %v488_v55  ;;  %v510_v42 = vmul.f32 %v502_v15, %v478_v20  ;;  %v515_v16 = vadd.f32 %v508_v59, %v507_v51  ;;  %v481_v30 = vmul.f32 %v473_v25, %v1193_v43 }
  0x78   :  { %v498_v34 = vmul.f32 0.75, %v1451_v47  ;;  %v505_v53 = vadd.f32 %v497_v3, %v489_v11  ;;  %v511_v23 = vmul.f32 %v503_v38, %v479_v36  ;;  %v482_v63 = vmul.f32 %v474_v41, %v1197_v56 }
  0x79   :  { %v516_v29 = vadd.f32 %v515_v16, %v509_v35  ;;  %v512_v24 = vmul.f32 %v504_v60, %v480_v58 }
  0x7a   :  { %v506_v1 = vadd.f32 %v498_v34, %v490_v52  ;;  %v513_v4 = vmul.f32 %v505_v53, %v481_v30 }
  0x7b   :  { %v517_v14 = vadd.f32 %v516_v29, %v510_v42 }
  0x7c   :  { %v514_v45 = vmul.f32 %v506_v1, %v482_v63 }
  0x7d   :  { %v518_v50 = vadd.f32 %v517_v14, %v511_v23 }
  0x7f   :  { %v519_v7 = vadd.f32 %v518_v50, %v512_v24 }
  0x81   :  { %v520_v12 = vadd.f32 %v519_v7, %v513_v4 }
  0x83   :  { %v521_v57 = vadd.f32 %v520_v12, %v514_v45 }
  0x85   :  { %522 = vst [vmem:[%s1337_s2] sm:$0xff] %v521_v57 }

</bundles_post_ra>
